<compile_context>
chip_gen: v7x
topology: tpu7x:2x2x1
jax: 0.10.0
libtpu: 0.0.40
codegen_flags: <defaults>
</compile_context>

<pallas_src>
import math
import numpy as np
import jax
import jax.numpy as jnp
from jax.experimental import pallas as pl
from jax.experimental.pallas import tpu as pltpu


# ---------------------------------------------------------------------------
# Kernel: straight tile copy (identity on the current block view)
# ---------------------------------------------------------------------------
def _copy_kernel(x_ref, o_ref):
    o_ref[...] = x_ref[...]


# ---------------------------------------------------------------------------
# Wrapper: view as 2-D, tiled lane-dense copy, reshape to squeezed shape
# ---------------------------------------------------------------------------
def same_forward(x, tile_rows=256):
    """JAX/Pallas equivalent of Same.forward: return x.squeeze(0)."""
    squeeze = x.ndim >= 1 and x.shape[0] == 1
    out_shape = x.shape[1:] if squeeze else x.shape

    # Degenerate cases: nothing to copy through a kernel.
    if x.ndim == 0 or x.size == 0:
        return jnp.reshape(x, out_shape)

    last = int(x.shape[-1])
    rows = int(x.size // last)
    x2 = jnp.reshape(x, (rows, last))  # metadata-only view for the kernel

    if rows % 8 == 0 and last % 128 == 0:
        # Lane/sublane-aligned: tile over rows with the largest aligned divisor
        # <= tile_rows (gcd of two multiples of 8 is itself a multiple of 8).
        tr = math.gcd(rows, int(tile_rows))
        grid = (rows // tr,)
        in_spec = pl.BlockSpec((tr, last), lambda i: (i, 0))
        out_spec = pl.BlockSpec((tr, last), lambda i: (i, 0))
    else:
        # Small / unaligned shapes: single full-extent block (always legal).
        grid = (1,)
        in_spec = pl.BlockSpec((rows, last), lambda i: (0, 0))
        out_spec = pl.BlockSpec((rows, last), lambda i: (0, 0))

    y2 = pl.pallas_call(
        _copy_kernel,
        out_shape=jax.ShapeDtypeStruct((rows, last), x.dtype),
        grid_spec=pltpu.PrefetchScalarGridSpec(
            num_scalar_prefetch=0,
            grid=grid,
            in_specs=[in_spec],
            out_specs=out_spec),
        compiler_params=pltpu.CompilerParams(
            dimension_semantics=("parallel",)),
    )(x2)
    return jnp.reshape(y2, out_shape)


class SamePallas:
    """JAX/Pallas equivalent of the PyTorch `Same` module."""

    def forward(self, x):
        return same_forward(x)


# ---------------------------------------------------------------------------
if __name__ == "__main__":
    key = jax.random.PRNGKey(0)
    k1, k2, k3 = jax.random.split(key, 3)
    model = SamePallas()

    # Case 1: lane-dense, tiled path ((1, 8, 16, 128) -> (8, 16, 128)).
    x1 = jax.random.normal(k1, (1, 8, 16, 128), jnp.float32)
    y1 = model.forward(x1)

    # Case 2: small unaligned shape, single-block fallback ((1,4,16,16) -> (4,16,16)).
    x2 = jax.random.normal(k2, (1, 4, 16, 16), jnp.float32)
    y2 = model.forward(x2)

    # Case 3: dim 0 != 1 -> squeeze(0) is a no-op, shape preserved.
    x3 = jax.random.normal(k3, (2, 4, 16, 16), jnp.float32)
    y3 = model.forward(x3)

    jax.block_until_ready((y1, y2, y3))

    # Correctness vs. the PyTorch semantics (x.squeeze(0)).
    assert y1.shape == (8, 16, 128)
    assert y2.shape == (4, 16, 16)
    assert y3.shape == (2, 4, 16, 16)
    np.testing.assert_array_equal(np.asarray(y1), np.asarray(jnp.squeeze(x1, 0)))
    np.testing.assert_array_equal(np.asarray(y2), np.asarray(jnp.squeeze(x2, 0)))
    np.testing.assert_array_equal(np.asarray(y3), np.asarray(x3))

    print("KERNEL_OK")
</pallas_src>

<mosaic_0001>
module attributes {stable_mosaic.version = 11 : i64} {
  func.func @_copy_kernel(%arg0: i32, %arg1: memref<128x128xf32, #tpu.memory_space<vmem>>, %arg2: memref<128x128xf32, #tpu.memory_space<vmem>>) attributes {dimension_semantics = [#tpu.dimension_semantics<parallel>], iteration_bounds = array<i64: 1>, scalar_prefetch = 0 : i64, scratch_operands = 0 : i64, tpu.core_type = #tpu.core_type<tc>, window_params = [{transform_indices = @transform_0, window_bounds = array<i64: 128, 128>}, {transform_indices = @transform_1, window_bounds = array<i64: 128, 128>}]} {
    %c0 = arith.constant 0 : index
    %c0_0 = arith.constant 0 : index
    %0 = vector.load %arg1[%c0, %c0_0] : memref<128x128xf32, #tpu.memory_space<vmem>>, vector<128x128xf32>
    %c0_1 = arith.constant 0 : index
    %c0_2 = arith.constant 0 : index
    %1 = vector.load %arg2[%c0_1, %c0_2] : memref<128x128xf32, #tpu.memory_space<vmem>>, vector<128x128xf32>
    tpu.vector_store %arg2[%c0_1, %c0_2], %0 {strides = array<i32>} : memref<128x128xf32, #tpu.memory_space<vmem>>, vector<128x128xf32>,
    return
  }
  func.func @transform_0(%arg0: i32) -> (i32, i32) {
    %c0_i32 = arith.constant 0 : i32
    %c0_i32_0 = arith.constant 0 : i32
    return %arg0, %c0_i32 : i32, i32
  }
  func.func @transform_1(%arg0: i32) -> (i32, i32) {
    %c0_i32 = arith.constant 0 : i32
    %c0_i32_0 = arith.constant 0 : i32
    return %arg0, %c0_i32 : i32, i32
  }
}

</mosaic_0001>

<bundles_post_ra>
// kernel: tpu_custom_call.1
= control target key start
LH: loop header
LB: loop body
LE: loop exit
PB: predicated region body
PF: predicated region fallthrough
CT: control target
= control target key end

     0   :  { %6 = vsyncpa [#allocation3], 0  ;;  %s168_s0 = inlined_call_operand.hbm [shape: f32[128,128], index: 0, kind: input, shape index: {}]   ;;  %s169_s1 = inlined_call_operand.hbm [shape: f32[128,128], index: 1, kind: output, shape index: {}]  }
   0x1   :  { %7 = vsyncpa [#allocation4], 0  ;;  %s124_s6 = smov [#allocation2]   ;;  %s76_s10 = scalar_lea.hbm %s168_s0, 2048 }
   0x2   :  { %s13_s7 = sshll.u32 %s124_s6, 4  ;;  %p77_p0 = scmp.ne.s32.totalorder %s168_s0, %s76_s10  ;;  %s14_s7 = int_to_ptr.vmem [resolvable:$true] %s13_s7 }
   0x3   :  { %p80_p1 = scmp.lt.u32.totalorder %s76_s10, %s168_s0 }
   0x5   :  { %p82_p2 = pnand %p80_p1, %p77_p0 }
   0x7   :  { %85 = shalt.err (!%p82_p2)
}
   0x8   :  { %s86_s15 = scalar_lea.vmem %s14_s7, 2048  ;;  %p91_p4 = scmp.lt.s32.totalorder %s14_s7, %s14_s7 }
   0x9   :  { %p87_p3 = scmp.ne.s32.totalorder %s14_s7, %s86_s15  ;;  %p92_p5 = scmp.lt.s32.totalorder %s86_s15, %s86_s15 }
   0xb   :  { %p93_p6 = por %p92_p5, %p91_p4 }
   0xd   :  { %p94_p7 = pnand %p93_p6, %p87_p3 }
   0xf   :  { %97 = shalt.err (!%p94_p7)
}
  0x10   :  { %s125_s16 = smov 128   ;;  %s126_s17 = smov 8  }
  0x11   :  { %19 = dma.hbm_to_vmem [thread:$0]  %s168_s0, 2048, %s14_s7, [#allocation3], %s125_s16, %s125_s16, %s126_s17  }
  0x12   :  { %120 = dma.done.wait [#allocation3], 2048  }
  0x13   :  { %121 = vsyncadd [#allocation3], 4294965248  ;;  %v23_v0 = vld [vmem:[#allocation2] sm:$0xff]  ;;  %v24_v1 = vld [vmem:[#allocation2 + $0x8] sm:$0xff]  ;;  %s127_s20 = smov [#allocation5]  }
  0x14   :  { %v25_v2 = vld [vmem:[#allocation2 + $0x10] sm:$0xff]  ;;  %39 = vst [vmem:[#allocation5] sm:$0xff] %v23_v0  ;;  %40 = vst [vmem:[#allocation5 + $0x8] sm:$0xff] %v24_v1  ;;  %v26_v3 = vld [vmem:[#allocation2 + $0x18] sm:$0xff]  ;;  %s60_s21 = sshll.u32 %s127_s20, 4  ;;  %s61_s21 = int_to_ptr.vmem [resolvable:$true] %s60_s21 }
  0x15   :  { %41 = vst [vmem:[#allocation5 + $0x10] sm:$0xff] %v25_v2  ;;  %v27_v4 = vld [vmem:[#allocation2 + $0x20] sm:$0xff]  ;;  %v28_v5 = vld [vmem:[#allocation2 + $0x28] sm:$0xff]  ;;  %42 = vst [vmem:[#allocation5 + $0x18] sm:$0xff] %v26_v3  ;;  %s98_s0 = scalar_lea.vmem %s61_s21, 2048  ;;  %p103_p9 = scmp.lt.s32.totalorder %s61_s21, %s61_s21 }
  0x16   :  { %43 = vst [vmem:[#allocation5 + $0x20] sm:$0xff] %v27_v4  ;;  %44 = vst [vmem:[#allocation5 + $0x28] sm:$0xff] %v28_v5  ;;  %v29_v6 = vld [vmem:[#allocation2 + $0x30] sm:$0xff]  ;;  %v30_v7 = vld [vmem:[#allocation2 + $0x38] sm:$0xff]  ;;  %p99_p8 = scmp.ne.s32.totalorder %s61_s21, %s98_s0  ;;  %p104_p10 = scmp.lt.s32.totalorder %s98_s0, %s98_s0 }
  0x17   :  { %v31_v8 = vld [vmem:[#allocation2 + $0x40] sm:$0xff]  ;;  %45 = vst [vmem:[#allocation5 + $0x30] sm:$0xff] %v29_v6  ;;  %46 = vst [vmem:[#allocation5 + $0x38] sm:$0xff] %v30_v7  ;;  %v32_v9 = vld [vmem:[#allocation2 + $0x48] sm:$0xff] }
  0x18   :  { %47 = vst [vmem:[#allocation5 + $0x40] sm:$0xff] %v31_v8  ;;  %v33_v10 = vld [vmem:[#allocation2 + $0x50] sm:$0xff]  ;;  %v34_v11 = vld [vmem:[#allocation2 + $0x58] sm:$0xff]  ;;  %48 = vst [vmem:[#allocation5 + $0x48] sm:$0xff] %v32_v9  ;;  %p105_p11 = por %p104_p10, %p103_p9 }
  0x19   :  { %49 = vst [vmem:[#allocation5 + $0x50] sm:$0xff] %v33_v10  ;;  %50 = vst [vmem:[#allocation5 + $0x58] sm:$0xff] %v34_v11  ;;  %v35_v12 = vld [vmem:[#allocation2 + $0x60] sm:$0xff]  ;;  %v36_v13 = vld [vmem:[#allocation2 + $0x68] sm:$0xff] }
  0x1a   :  { %v37_v14 = vld [vmem:[#allocation2 + $0x70] sm:$0xff]  ;;  %51 = vst [vmem:[#allocation5 + $0x60] sm:$0xff] %v35_v12  ;;  %52 = vst [vmem:[#allocation5 + $0x68] sm:$0xff] %v36_v13  ;;  %v38_v15 = vld [vmem:[#allocation2 + $0x78] sm:$0xff]  ;;  %p106_p12 = pnand %p105_p11, %p99_p8 }
  0x1b   :  { %53 = vst [vmem:[#allocation5 + $0x70] sm:$0xff] %v37_v14  ;;  %54 = vst [vmem:[#allocation5 + $0x78] sm:$0xff] %v38_v15 }
  0x1c   :  { %109 = shalt.err (!%p106_p12)
}
  0x1d   :  { %s110_s24 = scalar_lea.hbm %s169_s1, 2048 }
  0x1e   :  { %p111_p13 = scmp.ne.s32.totalorder %s169_s1, %s110_s24  ;;  %p114_p0 = scmp.lt.u32.totalorder %s110_s24, %s169_s1 }
  0x20   :  { %p116_p1 = pnand %p114_p0, %p111_p13 }
  0x22   :  { %119 = shalt.err (!%p116_p1)
}
  0x23   :  { %66 = dma.vmem_to_hbm [thread:$0]  %s61_s21, 2048, %s169_s1, [#allocation4], %s125_s16, %s125_s16, %s126_s17  }
  0x24   :  { %122 = dma.done.wait [#allocation4], 2048  }
  0x25   :  { %123 = vsyncadd [#allocation4], 4294965248 }
  0x26   :  { %70 = vsyncpa [#allocation3], 1 }
  0x27   :  { %71 = vsyncpa [#allocation4], 1 }

</bundles_post_ra>
